<compile_context>
chip_gen: v5e
topology: v5e:2x2
jax: 0.10.0
libtpu: 0.0.40
codegen_flags: <defaults>
</compile_context>

<pallas_src>
import numpy as np
import jax
import jax.numpy as jnp
from jax.experimental import pallas as pl
from jax.experimental.pallas import tpu as pltpu

# Stand-in feature sizes (original model: resnet152 feat=2048, fc_hidden=512, embed=300).
FEAT = 128            # TODO(synk): real resnet152 produces 2048-d features.
FC_HIDDEN1 = 128
FC_HIDDEN2 = 128
CNN_EMBED_DIM = 32
E_PAD = 128           # fc3 output zero-padded to lane-dense 128 columns in-kernel.
BN_EPS = 1e-5

LANE = 128
SUBLANE = 8
TILE_N_CAP = 2048            # upper bound on rows per grid step.
TARGET_GRID = 4              # aim for >= 4 grid steps so v7x's 2 TCs both get work.
VMEM_TILE_BUDGET = 24 << 20  # bytes budgeted for (double-buffered) tiles + weights.
VMEM_LIMIT_BYTES = 48 << 20  # explicit scoped limit; within physical VMEM on all gens.


def _round_up(x, m):
    return (x + m - 1) // m * m


# ----------------------------------------------------------------------------
# Kernel: four lane-dense bf16 MXU matmuls with f32 accumulation + ReLUs.
# ----------------------------------------------------------------------------
def _encoder_kernel(x_ref, w0_ref, wfc_ref, b_ref, out_ref):
    # w0:  conv(1->3,3x3) + global-avg-pool + (3 -> FEAT) linear, folded on host.
    # wfc: stacked [fc1(+bn1), fc2(+bn2), fc3(padded)] weights, (3, 128, 128) bf16.
    # b:   packed [b0, b1, b2, b3] biases, (4, 128) f32.
    x = x_ref[...].astype(jnp.bfloat16)                 # no-op if frames already bf16
    b = b_ref[...]

    feat = jnp.dot(x, w0_ref[...], preferred_element_type=jnp.float32) + b[0:1, :]
    feat = jnp.maximum(feat, 0.0)                       # ReLU of the resnet stand-in head

    h1 = jnp.dot(feat.astype(jnp.bfloat16), wfc_ref[0],
                 preferred_element_type=jnp.float32) + b[1:2, :]
    h1 = jnp.maximum(h1, 0.0)                           # fc1 -> bn1 (folded) -> relu

    h2 = jnp.dot(h1.astype(jnp.bfloat16), wfc_ref[1],
                 preferred_element_type=jnp.float32) + b[2:3, :]
    h2 = jnp.maximum(h2, 0.0)                           # fc2 -> bn2 (folded) -> relu

    # F.dropout(p=0.3): identity in eval (inference) mode.

    out = jnp.dot(h2.astype(jnp.bfloat16), wfc_ref[2],
                  preferred_element_type=jnp.float32) + b[3:4, :]      # fc3 (padded)
    out_ref[...] = out.astype(out_ref.dtype)            # unmasked 128-lane bf16 store


# ----------------------------------------------------------------------------
# Host-side parameter folding.
# ----------------------------------------------------------------------------
def _window_sum_matrix(h, w):
    """M[p*W+q, di*3+dj] = 1 iff pixel (p,q) lies in the valid-conv window (di,dj)."""
    hc, wc = h - 2, w - 2
    m = np.zeros((h * w, 9), np.float32)
    for di in range(3):
        for dj in range(3):
            mask = np.zeros((h, w), np.float32)
            mask[di:di + hc, dj:dj + wc] = 1.0
            m[:, di * 3 + dj] = mask.reshape(-1)
    return jnp.asarray(m)


def fold_params(params, h, w, hw_pad):
    """Fold conv+pool+stand-in-linear and BN layers into packed matmul weights."""
    hc, wc = h - 2, w - 2
    inv_area = 1.0 / float(hc * wc)
    hw = h * w

    # Frontend: pooled_c = inv_area * sum_{di,dj} w[c,di,dj] * window_sum[di,dj] + b_c.
    # Fold window sums, conv weights and the (3 -> FEAT) stand-in linear into one
    # (H*W, FEAT) matrix (exact: no nonlinearity between conv and pool here).
    m = _window_sum_matrix(h, w)                                 # (hw, 9)
    convw = params["conv_w"].reshape(3, 9)                       # (cout, kh*kw)
    a = (m @ convw.T) * inv_area                                 # (hw, 3)
    w0 = a @ params["res_w"]                                     # (hw, FEAT)
    b0 = params["conv_b"] @ params["res_w"] + params["res_b"]    # (1, FEAT)
    w0 = jnp.pad(w0, ((0, hw_pad - hw), (0, 0)))                 # zero rows for lane pad

    # fc1 + bn1 fold (inference mode, running stats).
    s1 = params["bn1_g"] * jax.lax.rsqrt(params["bn1_v"] + BN_EPS)
    w1 = params["fc1_w"] * s1
    b1 = (params["fc1_b"] - params["bn1_m"]) * s1 + params["bn1_b"]

    # fc2 + bn2 fold.
    s2 = params["bn2_g"] * jax.lax.rsqrt(params["bn2_v"] + BN_EPS)
    w2 = params["fc2_w"] * s2
    b2 = (params["fc2_b"] - params["bn2_m"]) * s2 + params["bn2_b"]

    # fc3, zero-padded to a lane-dense 128-wide output.
    w3 = jnp.pad(params["fc3_w"], ((0, 0), (0, E_PAD - CNN_EMBED_DIM)))
    b3 = jnp.pad(params["fc3_b"], ((0, 0), (0, E_PAD - CNN_EMBED_DIM)))

    # TODO(synk): at real dims (FEAT=2048, 224x224 frames) w0 no longer fits VMEM
    # resident -> add a K grid axis over H*W with a pl.when-initialized accumulator.
    return dict(
        w0=w0.astype(jnp.bfloat16),                                   # (hw_pad, FEAT)
        wfc=jnp.stack([w1, w2, w3]).astype(jnp.bfloat16),             # (3, 128, 128)
        bias=jnp.concatenate([b0, b1, b2, b3], axis=0).astype(jnp.float32),  # (4, 128)
    )


def init_params(key):
    ks = jax.random.split(key, 18)
    u = lambda k, shp, lo=-0.1, hi=0.1: jax.random.uniform(k, shp, jnp.float32, lo, hi)
    return dict(
        conv_w=u(ks[0], (3, 1, 3, 3)),
        conv_b=u(ks[1], (3,)),
        res_w=u(ks[2], (3, FEAT)),          # TODO(synk): stand-in for frozen resnet152.
        res_b=u(ks[3], (1, FEAT)),
        fc1_w=u(ks[4], (FEAT, FC_HIDDEN1)),
        fc1_b=u(ks[5], (1, FC_HIDDEN1)),
        bn1_g=u(ks[6], (1, FC_HIDDEN1), 0.9, 1.1),
        bn1_b=u(ks[7], (1, FC_HIDDEN1)),
        bn1_m=u(ks[8], (1, FC_HIDDEN1)),
        bn1_v=u(ks[9], (1, FC_HIDDEN1), 0.5, 1.5),
        fc2_w=u(ks[10], (FC_HIDDEN1, FC_HIDDEN2)),
        fc2_b=u(ks[11], (1, FC_HIDDEN2)),
        bn2_g=u(ks[12], (1, FC_HIDDEN2), 0.9, 1.1),
        bn2_b=u(ks[13], (1, FC_HIDDEN2)),
        bn2_m=u(ks[14], (1, FC_HIDDEN2)),
        bn2_v=u(ks[15], (1, FC_HIDDEN2), 0.5, 1.5),
        fc3_w=u(ks[16], (FC_HIDDEN2, CNN_EMBED_DIM)),
        fc3_b=u(ks[17], (1, CNN_EMBED_DIM)),
    )


# ----------------------------------------------------------------------------
# Tile selection: VMEM-budget aware, megacore aware.
# ----------------------------------------------------------------------------
def _choose_tile_n(n, hw_eff, frame_itemsize, weight_bytes):
    # Double-buffered frame tile + double-buffered bf16 output tile per row.
    per_row = 2 * hw_eff * frame_itemsize + 2 * E_PAD * 2
    avail = max(VMEM_TILE_BUDGET - 2 * weight_bytes, per_row * SUBLANE)
    tile = (avail // per_row) // SUBLANE * SUBLANE
    tile = min(tile, TILE_N_CAP)
    # Keep at least TARGET_GRID grid steps so "parallel" can shard across v7x's 2 TCs.
    tile = min(tile, max(SUBLANE, _round_up(pl.cdiv(n, TARGET_GRID), SUBLANE)))
    return max(SUBLANE, tile)


# ----------------------------------------------------------------------------
# Wrapper: grid over N (= B*T), weights un-gridded and resident in VMEM.
# ----------------------------------------------------------------------------
def cnn_encoder_forward(x_3d, params):
    """x_3d: (B, T, 1, H, W) float32/bfloat16 -> (B, T, CNN_EMBED_DIM) float32."""
    b, t, c, h, w = x_3d.shape
    assert c == 1, "proj expects a single input channel"
    n = b * t
    hw = h * w
    hw_pad = _round_up(hw, LANE)

    folded = fold_params(params, h, w, hw_pad)

    # Frame stream: reshape is a no-copy view of the contiguous (B,T,1,H,W) array.
    frames = x_3d.reshape(n, hw)
    if hw_pad != hw:
        # Rare lane-pad path: fuse the bf16 cast into the one unavoidable pad pass.
        frames = jnp.pad(frames.astype(jnp.bfloat16), ((0, 0), (0, hw_pad - hw)))
    # else: pass frames through untouched (f32 or bf16); the kernel casts per tile,
    # avoiding a standalone HBM cast pass. No row padding: partial last block is
    # handled by Pallas and garbage rows never escape the output.

    weight_bytes = sum(int(v.size) * v.dtype.itemsize for v in folded.values())
    tile_n = _choose_tile_n(n, hw_pad, frames.dtype.itemsize, weight_bytes)
    grid = (pl.cdiv(n, tile_n),)

    def full(arr):
        nd = arr.ndim
        return pl.BlockSpec(arr.shape, lambda i: (0,) * nd)

    flops = 2 * n * (hw_pad * FEAT + FEAT * FC_HIDDEN1
                     + FC_HIDDEN1 * FC_HIDDEN2 + FC_HIDDEN2 * E_PAD)
    bytes_accessed = (int(frames.size) * frames.dtype.itemsize
                      + n * E_PAD * 2 + weight_bytes)

    out = pl.pallas_call(
        _encoder_kernel,
        out_shape=jax.ShapeDtypeStruct((n, E_PAD), jnp.bfloat16),
        grid=grid,
        in_specs=[pl.BlockSpec((tile_n, hw_pad), lambda i: (i, 0)),   # frames (pipelined)
                  full(folded["w0"]), full(folded["wfc"]), full(folded["bias"])],
        out_specs=pl.BlockSpec((tile_n, E_PAD), lambda i: (i, 0)),
        compiler_params=pltpu.CompilerParams(
            dimension_semantics=("parallel",),            # shard rows on v7x's 2 TCs
            vmem_limit_bytes=VMEM_LIMIT_BYTES),
        cost_estimate=pl.CostEstimate(
            flops=flops, transcendentals=0, bytes_accessed=bytes_accessed),
    )(frames, folded["w0"], folded["wfc"], folded["bias"])

    out = out[:, :CNN_EMBED_DIM].astype(jnp.float32)
    # PyTorch: stack over t (dim 0) then transpose(0,1) -> (B, T, E).
    return out.reshape(b, t, CNN_EMBED_DIM)


if __name__ == "__main__":
    key = jax.random.PRNGKey(0)
    k_x, k_p = jax.random.split(key)

    B, T, C, H, W = 2, 3, 1, 16, 16
    x_3d = jax.random.normal(k_x, (B, T, C, H, W), jnp.float32)
    params = init_params(k_p)

    y = cnn_encoder_forward(x_3d, params)
    y = jax.block_until_ready(y)
    assert y.shape == (B, T, CNN_EMBED_DIM), y.shape
    assert bool(jnp.all(jnp.isfinite(y)))
    print("KERNEL_OK")
</pallas_src>

<mosaic_0001>
module attributes {stable_mosaic.version = 11 : i64} {
  func.func @_encoder_kernel(%arg0: i32, %arg1: memref<8x256xf32, #tpu.memory_space<vmem>>, %arg2: memref<256x128xbf16, #tpu.memory_space<vmem>>, %arg3: memref<3x128x128xbf16, #tpu.memory_space<vmem>>, %arg4: memref<4x128xf32, #tpu.memory_space<vmem>>, %arg5: memref<8x128xbf16, #tpu.memory_space<vmem>>) attributes {dimension_semantics = [#tpu.dimension_semantics<parallel>], iteration_bounds = array<i64: 1>, scalar_prefetch = 0 : i64, scratch_operands = 0 : i64, tpu.core_type = #tpu.core_type<tc>, window_params = [{transform_indices = @transform_0, window_bounds = array<i64: 8, 256>}, {pipeline_mode = #tpu.pipeline_mode<synchronous>, transform_indices = @transform_1, window_bounds = array<i64: 256, 128>}, {pipeline_mode = #tpu.pipeline_mode<synchronous>, transform_indices = @transform_2, window_bounds = array<i64: 3, 128, 128>}, {pipeline_mode = #tpu.pipeline_mode<synchronous>, transform_indices = @transform_3, window_bounds = array<i64: 4, 128>}, {transform_indices = @transform_4, window_bounds = array<i64: 8, 128>}]} {
    %c0 = arith.constant 0 : index
    %c0_0 = arith.constant 0 : index
    %0 = vector.load %arg1[%c0, %c0_0] : memref<8x256xf32, #tpu.memory_space<vmem>>, vector<8x256xf32>
    %1 = arith.truncf %0 : vector<8x256xf32> to vector<8x256xbf16>
    %c0_1 = arith.constant 0 : index
    %c0_2 = arith.constant 0 : index
    %2 = vector.load %arg4[%c0_1, %c0_2] : memref<4x128xf32, #tpu.memory_space<vmem>>, vector<4x128xf32>
    %c0_3 = arith.constant 0 : index
    %c0_4 = arith.constant 0 : index
    %3 = vector.load %arg2[%c0_3, %c0_4] : memref<256x128xbf16, #tpu.memory_space<vmem>>, vector<256x128xbf16>
    %cst = arith.constant dense<0.000000e+00> : vector<8x128xf32>
    %4 = tpu.matmul %1, %3, %cst {dimension_numbers = #tpu.dot_dimension_numbers<[1], [0], [0], [1], [0, 0, 1, 1], [], []>} : vector<8x256xbf16>, vector<256x128xbf16>, vector<8x128xf32> -> vector<8x128xf32>
    %5 = vector.extract_strided_slice %2 {offsets = [0, 0], sizes = [1, 128], strides = [1, 1]} : vector<4x128xf32> to vector<1x128xf32>
    %6 = vector.broadcast %5 : vector<1x128xf32> to vector<8x128xf32>
    %7 = arith.addf %4, %6 : vector<8x128xf32>
    %cst_5 = arith.constant 0.000000e+00 : f32
    %8 = vector.broadcast %cst_5 : f32 to vector<8x128xf32>
    %9 = arith.maximumf %7, %8 : vector<8x128xf32>
    %10 = arith.truncf %9 : vector<8x128xf32> to vector<8x128xbf16>
    %c0_6 = arith.constant 0 : index
    %c0_7 = arith.constant 0 : index
    %c0_8 = arith.constant 0 : index
    %11 = vector.load %arg3[%c0_6, %c0_7, %c0_8] : memref<3x128x128xbf16, #tpu.memory_space<vmem>>, vector<1x128x128xbf16>
    %12 = vector.shape_cast %11 : vector<1x128x128xbf16> to vector<128x128xbf16>
    %cst_9 = arith.constant dense<0.000000e+00> : vector<8x128xf32>
    %13 = tpu.matmul %10, %12, %cst_9 {dimension_numbers = #tpu.dot_dimension_numbers<[1], [0], [0], [1], [0, 0, 1, 1], [], []>} : vector<8x128xbf16>, vector<128x128xbf16>, vector<8x128xf32> -> vector<8x128xf32>
    %14 = vector.extract_strided_slice %2 {offsets = [1, 0], sizes = [1, 128], strides = [1, 1]} : vector<4x128xf32> to vector<1x128xf32>
    %15 = vector.broadcast %14 : vector<1x128xf32> to vector<8x128xf32>
    %16 = arith.addf %13, %15 : vector<8x128xf32>
    %cst_10 = arith.constant 0.000000e+00 : f32
    %17 = vector.broadcast %cst_10 : f32 to vector<8x128xf32>
    %18 = arith.maximumf %16, %17 : vector<8x128xf32>
    %19 = arith.truncf %18 : vector<8x128xf32> to vector<8x128xbf16>
    %c1 = arith.constant 1 : index
    %c0_11 = arith.constant 0 : index
    %c0_12 = arith.constant 0 : index
    %20 = vector.load %arg3[%c1, %c0_11, %c0_12] : memref<3x128x128xbf16, #tpu.memory_space<vmem>>, vector<1x128x128xbf16>
    %21 = vector.shape_cast %20 : vector<1x128x128xbf16> to vector<128x128xbf16>
    %cst_13 = arith.constant dense<0.000000e+00> : vector<8x128xf32>
    %22 = tpu.matmul %19, %21, %cst_13 {dimension_numbers = #tpu.dot_dimension_numbers<[1], [0], [0], [1], [0, 0, 1, 1], [], []>} : vector<8x128xbf16>, vector<128x128xbf16>, vector<8x128xf32> -> vector<8x128xf32>
    %23 = vector.extract_strided_slice %2 {offsets = [2, 0], sizes = [1, 128], strides = [1, 1]} : vector<4x128xf32> to vector<1x128xf32>
    %24 = vector.broadcast %23 : vector<1x128xf32> to vector<8x128xf32>
    %25 = arith.addf %22, %24 : vector<8x128xf32>
    %cst_14 = arith.constant 0.000000e+00 : f32
    %26 = vector.broadcast %cst_14 : f32 to vector<8x128xf32>
    %27 = arith.maximumf %25, %26 : vector<8x128xf32>
    %28 = arith.truncf %27 : vector<8x128xf32> to vector<8x128xbf16>
    %c2 = arith.constant 2 : index
    %c0_15 = arith.constant 0 : index
    %c0_16 = arith.constant 0 : index
    %29 = vector.load %arg3[%c2, %c0_15, %c0_16] : memref<3x128x128xbf16, #tpu.memory_space<vmem>>, vector<1x128x128xbf16>
    %30 = vector.shape_cast %29 : vector<1x128x128xbf16> to vector<128x128xbf16>
    %cst_17 = arith.constant dense<0.000000e+00> : vector<8x128xf32>
    %31 = tpu.matmul %28, %30, %cst_17 {dimension_numbers = #tpu.dot_dimension_numbers<[1], [0], [0], [1], [0, 0, 1, 1], [], []>} : vector<8x128xbf16>, vector<128x128xbf16>, vector<8x128xf32> -> vector<8x128xf32>
    %32 = vector.extract_strided_slice %2 {offsets = [3, 0], sizes = [1, 128], strides = [1, 1]} : vector<4x128xf32> to vector<1x128xf32>
    %33 = vector.broadcast %32 : vector<1x128xf32> to vector<8x128xf32>
    %34 = arith.addf %31, %33 : vector<8x128xf32>
    %35 = arith.truncf %34 : vector<8x128xf32> to vector<8x128xbf16>
    %c0_18 = arith.constant 0 : index
    %c0_19 = arith.constant 0 : index
    %36 = vector.load %arg5[%c0_18, %c0_19] : memref<8x128xbf16, #tpu.memory_space<vmem>>, vector<8x128xbf16>
    tpu.vector_store %arg5[%c0_18, %c0_19], %35 {strides = array<i32>} : memref<8x128xbf16, #tpu.memory_space<vmem>>, vector<8x128xbf16>,
    return
  }
  func.func @transform_0(%arg0: i32) -> (i32, i32) {
    %c0_i32 = arith.constant 0 : i32
    %c0_i32_0 = arith.constant 0 : i32
    return %arg0, %c0_i32 : i32, i32
  }
  func.func @transform_1(%arg0: i32) -> (i32, i32) {
    %c0_i32 = arith.constant 0 : i32
    %c0_i32_0 = arith.constant 0 : i32
    %c0_i32_1 = arith.constant 0 : i32
    return %c0_i32, %c0_i32_0 : i32, i32
  }
  func.func @transform_2(%arg0: i32) -> (i32, i32, i32) {
    %c0_i32 = arith.constant 0 : i32
    %c0_i32_0 = arith.constant 0 : i32
    %c0_i32_1 = arith.constant 0 : i32
    %c0_i32_2 = arith.constant 0 : i32
    return %c0_i32, %c0_i32_0, %c0_i32_1 : i32, i32, i32
  }
  func.func @transform_3(%arg0: i32) -> (i32, i32) {
    %c0_i32 = arith.constant 0 : i32
    %c0_i32_0 = arith.constant 0 : i32
    %c0_i32_1 = arith.constant 0 : i32
    return %c0_i32, %c0_i32_0 : i32, i32
  }
  func.func @transform_4(%arg0: i32) -> (i32, i32) {
    %c0_i32 = arith.constant 0 : i32
    %c0_i32_0 = arith.constant 0 : i32
    return %arg0, %c0_i32 : i32, i32
  }
}

</mosaic_0001>

<bundles_post_ra>
// kernel: tpu_custom_call.1
= control target key start
LH: loop header
LB: loop body
LE: loop exit
PB: predicated region body
PF: predicated region fallthrough
CT: control target
= control target key end

     0   :  { %9 = vsyncpa [#allocation3], 0  ;;  %s882_s0 = inlined_call_operand.hbm [shape: f32[6,256], index: 0, kind: input, shape index: {}]   ;;  %s883_s1 = inlined_call_operand.hbm [shape: bf16[256,128], index: 1, kind: input, shape index: {}]   ;;  %s884_s2 = inlined_call_operand.hbm [shape: bf16[3,128,128], index: 2, kind: input, shape index: {}]   ;;  %s885_s3 = inlined_call_operand.hbm [shape: f32[4,128], index: 3, kind: input, shape index: {}]   ;;  %s886_s4 = inlined_call_operand.hbm [shape: bf16[6,128], index: 4, kind: output, shape index: {}]  }
   0x1   :  { %10 = vsyncpa [#allocation6], 0 }
   0x2   :  { %11 = vsyncpa [#allocation9], 0  ;;  %s28_s17 = sshll.u32 %s883_s1, 4  ;;  %s29_s17 = int_to_ptr.hbm [resolvable:$true] %s28_s17 }
   0x3   :  { %12 = vsyncpa [#allocation4], 0  ;;  %s835_s18 = smov [#allocation5]   ;;  %s18_s22 = sshll.u32 %s882_s0, 4  ;;  %s19_s22 = int_to_ptr.hbm [resolvable:$true] %s18_s22 }
   0x4   :  { %s30_s19 = sshll.u32 %s835_s18, 4  ;;  %s836_s23 = smov 64   ;;  %s31_s19 = int_to_ptr.vmem [resolvable:$true] %s30_s19 }
   0x5   :  { %s837_s24 = smov 4   ;;  %s838_s25 = smov [#allocation2]  }
   0x6   :  { %36 = dma.hbm_to_vmem [thread:$0]  %s29_s17, 2048, %s31_s19, [#allocation6], %s836_s23, %s836_s23, %s837_s24  }
   0x7   :  { %s20_s26 = sshll.u32 %s838_s25, 4  ;;  %s41_s29 = sshll.u32 %s884_s2, 4  ;;  %s21_s26 = int_to_ptr.vmem [resolvable:$true] %s20_s26  ;;  %s42_s29 = int_to_ptr.hbm [resolvable:$true] %s41_s29 }
   0x8   :  { %23 = dma.hbm_to_vmem [thread:$0]  %s19_s22, 256, %s21_s26, [#allocation3]  }
   0x9   :  { %s55_s5 = sshll.u32 %s885_s3, 4  ;;  %s839_s6 = smov [#allocation7]   ;;  %s56_s5 = int_to_ptr.hbm [resolvable:$true] %s55_s5 }
   0xa   :  { %s43_s7 = sshll.u32 %s839_s6, 4  ;;  %s840_s0 = smov [#allocation8]   ;;  %s44_s7 = int_to_ptr.vmem [resolvable:$true] %s43_s7 }
   0xb   :  { %49 = dma.hbm_to_vmem [thread:$0]  %s42_s29, 3072, %s44_s7, [#allocation6], %s836_s23, %s836_s23, %s837_s24  }
   0xc   :  { %s57_s8 = sshll.u32 %s840_s0, 4  ;;  %s58_s8 = int_to_ptr.vmem [resolvable:$true] %s57_s8 }
   0xd   :  { %60 = dma.hbm_to_vmem [thread:$0]  %s56_s5, 64, %s58_s8, [#allocation9]  }
   0xe   :  { %827 = dma.done.wait [#allocation3], 256  }
   0xf   :  { %828 = vsyncadd [#allocation3], 4294967040 }
  0x10   :  { %829 = dma.done.wait [#allocation6], 5120  }
  0x11   :  { %830 = vsyncadd [#allocation6], 4294962176 }
  0x12   :  { %831 = dma.done.wait [#allocation9], 64  }
  0x13   :  { %832 = vsyncadd [#allocation9], 4294967232  ;;  %v667_v0 = vld [vmem:[#allocation5 + $0x38] sm:$0xff]  ;;  %v666_v2 = vld [vmem:[#allocation5 + $0x30] sm:$0xff]  ;;  %s841_s2 = smov [#allocation10]   ;;  %s488_s11 = sshll.u32 %s886_s4, 4  ;;  %s489_s11 = int_to_ptr.hbm [resolvable:$true] %s488_s11 }
  0x14   :  { %v675_v1 = vld [vmem:[#allocation5 + $0x78] sm:$0xff]  ;;  %211 = vmatpush.bf16.msra.mxu0 %v667_v0  ;;  %v674_v3 = vld [vmem:[#allocation5 + $0x70] sm:$0xff]  ;;  %v665_v4 = vld [vmem:[#allocation5 + $0x28] sm:$0xff]  ;;  %s486_s3 = sshll.u32 %s841_s2, 4  ;;  %s487_s3 = int_to_ptr.vmem [resolvable:$true] %s486_s3 }
  0x15   :  { %224 = vmatpush.bf16.msra.mxu1 %v675_v1  ;;  %v673_v5 = vld [vmem:[#allocation5 + $0x68] sm:$0xff]  ;;  %v683_v6 = vld [vmem:[#allocation7 + $0x38] sm:$0xff]  ;;  %v682_v7 = vld [vmem:[#allocation7 + $0x30] sm:$0xff] }
  0x16   :  { %304 = vmatpush.bf16.msra.mxu2 %v683_v6  ;;  %v664_v8 = vld [vmem:[#allocation5 + $0x20] sm:$0xff]  ;;  %v681_v10 = vld [vmem:[#allocation7 + $0x28] sm:$0xff]  ;;  %v663_v11 = vld [vmem:[#allocation5 + $0x18] sm:$0xff] }
  0x17   :  { %v672_v9 = vld [vmem:[#allocation5 + $0x60] sm:$0xff]  ;;  %v671_v12 = vld [vmem:[#allocation5 + $0x58] sm:$0xff]  ;;  %v662_v14 = vld [vmem:[#allocation5 + $0x10] sm:$0xff] }
  0x18   :  { %212 = vmatpush.bf16.msra.mxu0 %v666_v2  ;;  %v680_v13 = vld [vmem:[#allocation7 + $0x20] sm:$0xff]  ;;  %v670_v15 = vld [vmem:[#allocation5 + $0x50] sm:$0xff]  ;;  %v679_v16 = vld [vmem:[#allocation7 + $0x18] sm:$0xff] }
  0x19   :  { %225 = vmatpush.bf16.msra.mxu1 %v674_v3  ;;  %v661_v17 = vld [vmem:[#allocation5 + $0x8] sm:$0xff]  ;;  %v678_v19 = vld [vmem:[#allocation7 + $0x10] sm:$0xff]  ;;  %v660_v20 = vld [vmem:[#allocation5] sm:$0xff] }
  0x1a   :  { %305 = vmatpush.bf16.msra.mxu2 %v682_v7  ;;  %v669_v18 = vld [vmem:[#allocation5 + $0x48] sm:$0xff]  ;;  %v668_v21 = vld [vmem:[#allocation5 + $0x40] sm:$0xff]  ;;  %v77_v22 = vld [vmem:[#allocation2] sm:$0xff] }
  0x1b   :  { %v78_v23 = vld [vmem:[#allocation2 + $0x8] sm:$0xff]  ;;  %v79_v24 = vpack.c.bf16 %v77_v22, %v77_v22  ;;  %v677_v26 = vld [vmem:[#allocation7 + $0x8] sm:$0xff]  ;;  %v676_v27 = vld [vmem:[#allocation7] sm:$0xff] }
  0x1c   :  { %213 = vmatpush.bf16.msra.mxu0 %v665_v4  ;;  %v80_v25 = vpack.c.bf16 %v78_v23, %v78_v23  ;;  %v691_v28 = vld [vmem:[#allocation7 + $0x78] sm:$0xff]  ;;  %v690_v29 = vld [vmem:[#allocation7 + $0x70] sm:$0xff]  ;;  %v689_v30 = vld [vmem:[#allocation7 + $0x68] sm:$0xff] }
  0x1d   :  { %226 = vmatpush.bf16.msra.mxu1 %v673_v5  ;;  %385 = vmatpush.bf16.msra.mxu3 %v691_v28  ;;  %v688_v31 = vld [vmem:[#allocation7 + $0x60] sm:$0xff]  ;;  %v687_v32 = vld [vmem:[#allocation7 + $0x58] sm:$0xff]  ;;  %v686_v34 = vld [vmem:[#allocation7 + $0x50] sm:$0xff] }
  0x1e   :  { %306 = vmatpush.bf16.msra.mxu2 %v681_v10  ;;  %v81_v33 = vld [vmem:[#allocation8] sm:$0xf]  ;;  %v685_v44 = vld [vmem:[#allocation7 + $0x48] sm:$0xff]  ;;  %v699_v46 = vld [vmem:[#allocation7 + $0xb8] sm:$0xff] }
  0x1f   :  { %v114_v35 = vperm.slane %v81_v33, 0  ;;  %v684_v45 = vld [vmem:[#allocation7 + $0x40] sm:$0xff]  ;;  %v698_v47 = vld [vmem:[#allocation7 + $0xb0] sm:$0xff]  ;;  %v697_v48 = vld [vmem:[#allocation7 + $0xa8] sm:$0xff]  ;;  %v255_v52 = vperm.slane %v81_v33, 1  ;;  %v336_v60 = vperm.slane %v81_v33, 2 }
  0x20   :  { %214 = vmatpush.bf16.msra.mxu0 %v664_v8  ;;  %v696_v49 = vld [vmem:[#allocation7 + $0xa0] sm:$0xff]  ;;  %v695_v50 = vld [vmem:[#allocation7 + $0x98] sm:$0xff]  ;;  %v694_v51 = vld [vmem:[#allocation7 + $0x90] sm:$0xff]  ;;  %v417_v2 = vperm.slane %v81_v33, 3 }
  0x21   :  { %227 = vmatpush.bf16.msra.mxu1 %v672_v9  ;;  %386 = vmatpush.bf16.msra.mxu3 %v690_v29  ;;  %v693_v58 = vld [vmem:[#allocation7 + $0x88] sm:$0xff]  ;;  %v692_v59 = vld [vmem:[#allocation7 + $0x80] sm:$0xff] }
  0x22   :  { %307 = vmatpush.bf16.msra.mxu2 %v680_v13 }
  0x24   :  { %215 = vmatpush.bf16.msra.mxu0 %v663_v11 }
  0x25   :  { %228 = vmatpush.bf16.msra.mxu1 %v671_v12  ;;  %387 = vmatpush.bf16.msra.mxu3 %v689_v30 }
  0x26   :  { %308 = vmatpush.bf16.msra.mxu2 %v679_v16 }
  0x28   :  { %216 = vmatpush.bf16.msra.mxu0 %v662_v14 }
  0x29   :  { %229 = vmatpush.bf16.msra.mxu1 %v670_v15  ;;  %388 = vmatpush.bf16.msra.mxu3 %v688_v31 }
  0x2a   :  { %309 = vmatpush.bf16.msra.mxu2 %v678_v19 }
  0x2c   :  { %217 = vmatpush.bf16.msra.mxu0 %v661_v17 }
  0x2d   :  { %230 = vmatpush.bf16.msra.mxu1 %v669_v18  ;;  %389 = vmatpush.bf16.msra.mxu3 %v687_v32 }
  0x2e   :  { %310 = vmatpush.bf16.msra.mxu2 %v677_v26 }
  0x30   :  { %218 = vmatpush.bf16.msra.mxu0 %v660_v20 }
  0x31   :  { %231 = vmatpush.bf16.msra.mxu1 %v668_v21  ;;  %390 = vmatpush.bf16.msra.mxu3 %v686_v34 }
  0x32   :  { %311 = vmatpush.bf16.msra.mxu2 %v676_v27 }
  0x33   :  { %219 = vmatmul.bf16.vlgmr.msra.gmra.mxu0 %v79_v24 }
  0x34   :  { %232 = vmatmul.bf16.vlgmr.msra.gmra.mxu1 %v80_v25  ;;  %466 = vmatpush.bf16.msrb.mxu0 %v699_v46 }
  0x35   :  { %391 = vmatpush.bf16.msra.mxu3 %v685_v44 }
  0x38   :  { %467 = vmatpush.bf16.msrb.mxu0 %v698_v47 }
  0x39   :  { %392 = vmatpush.bf16.msra.mxu3 %v684_v45 }
  0x3c   :  { %468 = vmatpush.bf16.msrb.mxu0 %v697_v48 }
  0x40   :  { %469 = vmatpush.bf16.msrb.mxu0 %v696_v49 }
  0x44   :  { %470 = vmatpush.bf16.msrb.mxu0 %v695_v50 }
  0x48   :  { %471 = vmatpush.bf16.msrb.mxu0 %v694_v51 }
  0x4c   :  { %472 = vmatpush.bf16.msrb.mxu0 %v693_v58 }
  0x50   :  { %473 = vmatpush.bf16.msrb.mxu0 %v692_v59 }
  0xb0   :  { %v220_v36 = vpop.f32.mrf.mxu0 }
  0xb1   :  { %v233_v37 = vpop.f32.mrf.mxu1  ;;  %v221_v38 = vadd.f32 %v220_v36, %v114_v35 }
  0xb3   :  { %v234_v39 = vadd.f32 %v233_v37, %v221_v38 }
  0xb5   :  { %v237_v40 = vmax.f32 %v234_v39, 0.0 }
  0xb7   :  { %v238_v41 = vpack.c.bf16 %v237_v40, %v237_v40 }
  0xb8   :  { %v222_v42 = vpop.f32.mrf.mxu0 }
  0xb9   :  { %v235_v43 = vpop.f32.mrf.mxu1  ;;  %312 = vmatmul.bf16.vlgmr.msra.gmra.mxu2 %v238_v41 }
 0x13c   :  { %v313_v53 = vpop.f32.mrf.mxu2 }
 0x13d   :  { %v314_v54 = vadd.f32 %v313_v53, %v255_v52 }
 0x13f   :  { %v317_v55 = vmax.f32 %v314_v54, 0.0 }
 0x141   :  { %v318_v56 = vpack.c.bf16 %v317_v55, %v317_v55 }
 0x143   :  { %393 = vmatmul.bf16.vlgmr.msra.gmra.mxu3 %v318_v56 }
 0x144   :  { %v315_v57 = vpop.f32.mrf.mxu2 }
 0x1c6   :  { %v394_v61 = vpop.f32.mrf.mxu3 }
 0x1c7   :  { %v395_v62 = vadd.f32 %v394_v61, %v336_v60 }
 0x1c9   :  { %v398_v63 = vmax.f32 %v395_v62, 0.0 }
 0x1cb   :  { %v399_v0 = vpack.c.bf16 %v398_v63, %v398_v63 }
 0x1cd   :  { %474 = vmatmul.bf16.vlgmr.msrb.gmra.mxu0 %v399_v0 }
 0x1ce   :  { %v396_v1 = vpop.f32.mrf.mxu3 }
 0x24a   :  { %v475_v3 = vpop.f32.mrf.mxu0 }
 0x24b   :  { %v476_v4 = vadd.f32 %v475_v3, %v417_v2 }
 0x24d   :  { %v479_v5 = vpack.c.bf16 %v476_v4, %v476_v4 }
 0x24f   :  { %480 = vst [vmem:[#allocation10] sm:$0xf] %v479_v5 }
 0x250   :  { %491 = dma.vmem_to_hbm [thread:$0]  %s487_s3, 64, %s489_s11, [#allocation4]  }
 0x252   :  { %v477_v6 = vpop.f32.mrf.mxu0 }
 0x253   :  { %833 = dma.done.wait [#allocation4], 64  }
 0x254   :  { %834 = vsyncadd [#allocation4], 4294967232 }
 0x255   :  { %496 = vsyncpa [#allocation3], 1 }
 0x256   :  { %497 = vsyncpa [#allocation6], 1 }
 0x257   :  { %498 = vsyncpa [#allocation9], 1 }
 0x258   :  { %499 = vsyncpa [#allocation4], 1 }

</bundles_post_ra>
